<compile_context>
chip_gen: v6e
topology: v6e:2x2x1
jax: 0.10.0
libtpu: 0.0.40
codegen_flags: <defaults>
</compile_context>

<pallas_src>
import jax
import jax.numpy as jnp
import numpy as np
from jax.experimental import pallas as pl
from jax.experimental.pallas import tpu as pltpu


def _round_up(x: int, m: int) -> int:
    return (x + m - 1) // m * m


def _vmem_limit_bytes() -> int:
    """Per-generation scoped-VMEM budget (~85% of physical capacity)."""
    try:
        cap = int(pltpu.get_tpu_info().vmem_capacity_bytes)
    except Exception:
        cap = 128 * 1024 * 1024
    return int(cap * 0.85)


def _pick_hidden_chunk(d_in_p: int, pref: int = 512) -> int:
    """Hidden-dim chunk width: 512/256 preferred (matches 256-wide MXU), 128 min."""
    for c in (512, 256, 128):
        if c <= pref and d_in_p % c == 0:
            return c
    return 128


def _pick_batch_tile(batch: int, itemsize: int, block_m: int = 512):
    """Pick (tm, b_pad): dtype-aware sublane alignment, minimal padding waste,
    and >= 2 tiles for larger batches (megacore sharding on v7x)."""
    sub = max(8, 32 // max(1, itemsize))      # 8 rows f32, 16 bf16, 32 int8/fp8
    b_al = _round_up(batch, sub)
    if b_al <= 256:
        return b_al, b_al                     # small batch: single tile
    cands = []
    for tm in (512, 256, 128):
        if tm > block_m:
            continue
        b_pad = _round_up(b_al, tm)
        tiles = b_pad // tm
        # prefer >= 2 tiles, then minimal padding waste, then larger tm
        cands.append(((0 if tiles >= 2 else 1, b_pad - batch, -tm), tm, b_pad))
    if not cands:
        return b_al, b_al
    _, tm, b_pad = min(cands)
    return tm, b_pad


def prepare_linare_params(w1, b1, w2, b2, *, compute_dtype=jnp.bfloat16):
    """Pad (lane-align to 128) and cast the static parameters ONCE.

    w1: [D_in, D_in]  (transposed PyTorch layout)   b1: [D_in]
    w2: [D_in, D_out] (transposed PyTorch layout)   b2: [D_out]
    Weights are stored in `compute_dtype` (bf16 by default) for the MXU;
    biases stay f32 because they are added to f32 accumulators.
    """
    D_in = w1.shape[0]
    D_out = w2.shape[1]
    d_in_p = _round_up(D_in, 128)
    d_out_p = _round_up(D_out, 128)
    cdt = jnp.dtype(compute_dtype)
    w1_p = jnp.zeros((d_in_p, d_in_p), cdt).at[:D_in, :D_in].set(w1.astype(cdt))
    w2_p = jnp.zeros((d_in_p, d_out_p), cdt).at[:D_in, :D_out].set(w2.astype(cdt))
    b1_p = jnp.zeros((1, d_in_p), jnp.float32).at[0, :D_in].set(b1.astype(jnp.float32))
    b2_p = jnp.zeros((1, d_out_p), jnp.float32).at[0, :D_out].set(b2.astype(jnp.float32))
    return {
        "w1": w1_p, "b1": b1_p, "w2": w2_p, "b2": b2_p,
        "d_in": D_in, "d_out": D_out, "compute_dtype": cdt,
    }


def _resident_kernel(n_chunks: int, ck: int, compute_dtype):
    """Weights resident in VMEM; hidden dim chunked in-kernel (no full h)."""
    def kernel(x_ref, w1_ref, b1_ref, w2_ref, b2_ref, o_ref):
        x = x_ref[...].astype(compute_dtype)               # bf16 operands on MXU
        # Accumulator starts at the (broadcast) output bias; hoisted out of loop.
        acc = jnp.zeros(o_ref.shape, jnp.float32) + b2_ref[...]
        for c in range(n_chunks):                          # static chunk loop
            lo = c * ck
            h = jnp.dot(x, w1_ref[:, lo:lo + ck],
                        preferred_element_type=jnp.float32)
            h = h + b1_ref[:, lo:lo + ck]                  # (1, ck) broadcast
            acc = acc + jnp.dot(h.astype(compute_dtype), w2_ref[lo:lo + ck, :],
                                preferred_element_type=jnp.float32)
        o_ref[...] = acc.astype(o_ref.dtype)
    return kernel


def _ktiled_kernel(compute_dtype):
    """Hidden dim on the grid ("arbitrary"); f32 accumulator in VMEM scratch."""
    def kernel(x_ref, w1_ref, b1_ref, w2_ref, b2_ref, o_ref, acc_ref):
        k = pl.program_id(1)

        @pl.when(k == 0)
        def _():
            acc_ref[...] = jnp.zeros_like(acc_ref)

        x = x_ref[...].astype(compute_dtype)
        h = jnp.dot(x, w1_ref[...], preferred_element_type=jnp.float32)
        h = h + b1_ref[...]
        acc_ref[...] += jnp.dot(h.astype(compute_dtype), w2_ref[...],
                                preferred_element_type=jnp.float32)

        @pl.when(k == pl.num_programs(1) - 1)
        def _():
            o_ref[...] = (acc_ref[...] + b2_ref[...]).astype(o_ref.dtype)
    return kernel


def linare_projection_layer(features, params, *, block_m: int = 512,
                            hidden_chunk: int = 512, force_k_tiled=None):
    """Fused two-layer linear head. features: [B, D_in] -> [B, D_out]."""
    B, D_in = features.shape
    assert D_in == params["d_in"], "feature dim mismatch with prepared params"
    D_out = params["d_out"]
    compute_dtype = params["compute_dtype"]
    w1_p, b1_p, w2_p, b2_p = params["w1"], params["b1"], params["w2"], params["b2"]
    d_in_p = w1_p.shape[0]
    d_out_p = w2_p.shape[1]
    out_dtype = features.dtype

    xsz = jnp.dtype(out_dtype).itemsize
    wsz = jnp.dtype(compute_dtype).itemsize
    tm, b_pad = _pick_batch_tile(B, xsz, block_m)
    ck = _pick_hidden_chunk(d_in_p, hidden_chunk)

    # Skip the x padding copy entirely when already aligned (saves an HBM round trip).
    if b_pad == B and d_in_p == D_in:
        x_p = features
    else:
        x_p = jnp.zeros((b_pad, d_in_p), out_dtype).at[:B, :D_in].set(features)

    grid_b = b_pad // tm
    vmem_limit = _vmem_limit_bytes()

    # Resident-path VMEM footprint: single-buffered weights, double-buffered
    # x/out tiles, f32 accumulator + chunk temporaries.
    resident_bytes = ((d_in_p * d_in_p + d_in_p * d_out_p) * wsz
                      + 2 * tm * d_in_p * xsz
                      + 2 * tm * d_out_p * xsz
                      + tm * d_out_p * 4
                      + 2 * tm * ck * 4
                      + 4 * (d_in_p + d_out_p))
    use_k_tiled = (resident_bytes > int(0.75 * vmem_limit)
                   if force_k_tiled is None else bool(force_k_tiled))

    flops = 2 * b_pad * d_in_p * (d_in_p + d_out_p)
    bytes_accessed = (x_p.size * xsz + (w1_p.size + w2_p.size) * wsz
                      + (b1_p.size + b2_p.size) * 4 + b_pad * d_out_p * xsz)
    cost = pl.CostEstimate(flops=flops, transcendentals=0,
                           bytes_accessed=bytes_accessed)
    out_shape = jax.ShapeDtypeStruct((b_pad, d_out_p), out_dtype)

    if not use_k_tiled:
        kernel = _resident_kernel(d_in_p // ck, ck, compute_dtype)

        def call(buffered_weights: bool):
            wmode = {"pipeline_mode": pl.Buffered(1)} if buffered_weights else {}
            return pl.pallas_call(
                kernel,
                out_shape=out_shape,
                grid_spec=pl.GridSpec(
                    grid=(grid_b,),
                    in_specs=[
                        # streamed, double-buffered x tile
                        pl.BlockSpec((tm, d_in_p), lambda i: (i, 0)),
                        # grid-invariant weights/biases stay resident in VMEM
                        pl.BlockSpec((d_in_p, d_in_p), lambda i: (0, 0), **wmode),
                        pl.BlockSpec((1, d_in_p), lambda i: (0, 0), **wmode),
                        pl.BlockSpec((d_in_p, d_out_p), lambda i: (0, 0), **wmode),
                        pl.BlockSpec((1, d_out_p), lambda i: (0, 0), **wmode),
                    ],
                    # TODO(synk): on v5e with small D_in, sweep
                    # pipeline_mode=pl.Buffered(3) on the x/out specs to hide
                    # exposed streaming DMA latency.
                    out_specs=pl.BlockSpec((tm, d_out_p), lambda i: (i, 0)),
                ),
                compiler_params=pltpu.CompilerParams(
                    dimension_semantics=("parallel",),
                    vmem_limit_bytes=vmem_limit,
                ),
                cost_estimate=cost,
            )(x_p, w1_p, b1_p, w2_p, b2_p)

        try:
            out_p = call(True)     # single-buffer the grid-invariant weights
        except Exception:
            out_p = call(False)    # fall back if the pipeline_mode hint is rejected
    else:
        kernel = _ktiled_kernel(compute_dtype)
        out_p = pl.pallas_call(
            kernel,
            out_shape=out_shape,
            grid_spec=pltpu.PrefetchScalarGridSpec(
                num_scalar_prefetch=0,
                grid=(grid_b, d_in_p // ck),
                in_specs=[
                    pl.BlockSpec((tm, d_in_p), lambda i, k: (i, 0)),
                    pl.BlockSpec((d_in_p, ck), lambda i, k: (0, k)),
                    pl.BlockSpec((1, ck), lambda i, k: (0, k)),
                    pl.BlockSpec((ck, d_out_p), lambda i, k: (k, 0)),
                    pl.BlockSpec((1, d_out_p), lambda i, k: (0, 0)),
                ],
                out_specs=pl.BlockSpec((tm, d_out_p), lambda i, k: (i, 0)),
                scratch_shapes=[pltpu.VMEM((tm, d_out_p), jnp.float32)],
            ),
            compiler_params=pltpu.CompilerParams(
                dimension_semantics=("parallel", "arbitrary"),
                vmem_limit_bytes=vmem_limit,
            ),
            cost_estimate=cost,
        )(x_p, w1_p, b1_p, w2_p, b2_p)

    return out_p[:B, :D_out]


if __name__ == "__main__":
    # Small shapes consistent with the module's forward: features [B, input_size].
    batch = 8
    input_size = 32
    output_size = 16

    key = jax.random.PRNGKey(0)
    k_x, k_w1, k_b1, k_w2, k_b2 = jax.random.split(key, 5)

    x = jax.random.normal(k_x, (batch, input_size), dtype=jnp.float32)

    bound = 1.0 / (input_size ** 0.5)
    w1 = jax.random.uniform(k_w1, (input_size, input_size),
                            minval=-bound, maxval=bound, dtype=jnp.float32)
    b1 = jax.random.uniform(k_b1, (input_size,),
                            minval=-bound, maxval=bound, dtype=jnp.float32)
    w2 = jax.random.uniform(k_w2, (input_size, output_size),
                            minval=-bound, maxval=bound, dtype=jnp.float32)
    b2 = jax.random.uniform(k_b2, (output_size,),
                            minval=-bound, maxval=bound, dtype=jnp.float32)

    # f32 reference on the host (same math as the PyTorch module).
    xn, w1n, b1n, w2n, b2n = (np.asarray(a) for a in (x, w1, b1, w2, b2))
    ref = (xn @ w1n + b1n) @ w2n + b2n

    # Parameters are padded/cast to bf16 once (static, hoisted out of the call).
    params = prepare_linare_params(w1, b1, w2, b2)

    # Primary resident-weights path.
    out = linare_projection_layer(x, params)
    out = jax.block_until_ready(out)
    assert out.shape == (batch, output_size)
    # bf16-MXU tolerance-aware check (accumulation is f32).
    np.testing.assert_allclose(np.asarray(out, np.float32), ref, atol=5e-2, rtol=5e-2)

    # Exercise the K-tiled accumulator fallback path as well.
    out_kt = linare_projection_layer(x, params, force_k_tiled=True)
    out_kt = jax.block_until_ready(out_kt)
    np.testing.assert_allclose(np.asarray(out_kt, np.float32), ref, atol=5e-2, rtol=5e-2)

    print("KERNEL_OK")
</pallas_src>

<mosaic_0001>
module attributes {stable_mosaic.version = 11 : i64} {
  func.func @kernel(%arg0: i32, %arg1: memref<8x128xf32, #tpu.memory_space<vmem>>, %arg2: memref<128x128xbf16, #tpu.memory_space<vmem>>, %arg3: memref<1x128xf32, #tpu.memory_space<vmem>>, %arg4: memref<128x128xbf16, #tpu.memory_space<vmem>>, %arg5: memref<1x128xf32, #tpu.memory_space<vmem>>, %arg6: memref<8x128xf32, #tpu.memory_space<vmem>>) attributes {dimension_semantics = [#tpu.dimension_semantics<parallel>], iteration_bounds = array<i64: 1>, scalar_prefetch = 0 : i64, scratch_operands = 0 : i64, tpu.core_type = #tpu.core_type<tc>, window_params = [{transform_indices = @transform_0, window_bounds = array<i64: 8, 128>}, {pipeline_mode = #tpu.pipeline_mode<synchronous>, transform_indices = @transform_1, window_bounds = array<i64: 128, 128>}, {pipeline_mode = #tpu.pipeline_mode<synchronous>, transform_indices = @transform_2, window_bounds = array<i64: 1, 128>}, {pipeline_mode = #tpu.pipeline_mode<synchronous>, transform_indices = @transform_3, window_bounds = array<i64: 128, 128>}, {pipeline_mode = #tpu.pipeline_mode<synchronous>, transform_indices = @transform_4, window_bounds = array<i64: 1, 128>}, {transform_indices = @transform_5, window_bounds = array<i64: 8, 128>}]} {
    %c0 = arith.constant 0 : index
    %c0_0 = arith.constant 0 : index
    %0 = vector.load %arg1[%c0, %c0_0] : memref<8x128xf32, #tpu.memory_space<vmem>>, vector<8x128xf32>
    %1 = arith.truncf %0 : vector<8x128xf32> to vector<8x128xbf16>
    %cst = arith.constant 0.000000e+00 : f32
    %2 = vector.broadcast %cst : f32 to vector<8x128xf32>
    %c0_1 = arith.constant 0 : index
    %c0_2 = arith.constant 0 : index
    %3 = vector.load %arg5[%c0_1, %c0_2] : memref<1x128xf32, #tpu.memory_space<vmem>>, vector<1x128xf32>
    %4 = vector.broadcast %3 : vector<1x128xf32> to vector<8x128xf32>
    %5 = arith.addf %2, %4 : vector<8x128xf32>
    %c0_3 = arith.constant 0 : index
    %c0_4 = arith.constant 0 : index
    %6 = vector.load %arg2[%c0_3, %c0_4] : memref<128x128xbf16, #tpu.memory_space<vmem>>, vector<128x128xbf16>
    %cst_5 = arith.constant dense<0.000000e+00> : vector<8x128xf32>
    %7 = tpu.matmul %1, %6, %cst_5 {dimension_numbers = #tpu.dot_dimension_numbers<[1], [0], [0], [1], [0, 0, 1, 1], [], []>} : vector<8x128xbf16>, vector<128x128xbf16>, vector<8x128xf32> -> vector<8x128xf32>
    %c0_6 = arith.constant 0 : index
    %c0_7 = arith.constant 0 : index
    %8 = vector.load %arg3[%c0_6, %c0_7] : memref<1x128xf32, #tpu.memory_space<vmem>>, vector<1x128xf32>
    %9 = vector.broadcast %8 : vector<1x128xf32> to vector<8x128xf32>
    %10 = arith.addf %7, %9 : vector<8x128xf32>
    %11 = arith.truncf %10 : vector<8x128xf32> to vector<8x128xbf16>
    %c0_8 = arith.constant 0 : index
    %c0_9 = arith.constant 0 : index
    %12 = vector.load %arg4[%c0_8, %c0_9] : memref<128x128xbf16, #tpu.memory_space<vmem>>, vector<128x128xbf16>
    %cst_10 = arith.constant dense<0.000000e+00> : vector<8x128xf32>
    %13 = tpu.matmul %11, %12, %cst_10 {dimension_numbers = #tpu.dot_dimension_numbers<[1], [0], [0], [1], [0, 0, 1, 1], [], []>} : vector<8x128xbf16>, vector<128x128xbf16>, vector<8x128xf32> -> vector<8x128xf32>
    %14 = arith.addf %5, %13 : vector<8x128xf32>
    %c0_11 = arith.constant 0 : index
    %c0_12 = arith.constant 0 : index
    %15 = vector.load %arg6[%c0_11, %c0_12] : memref<8x128xf32, #tpu.memory_space<vmem>>, vector<8x128xf32>
    tpu.vector_store %arg6[%c0_11, %c0_12], %14 {strides = array<i32>} : memref<8x128xf32, #tpu.memory_space<vmem>>, vector<8x128xf32>,
    return
  }
  func.func @transform_0(%arg0: i32) -> (i32, i32) {
    %c0_i32 = arith.constant 0 : i32
    %c0_i32_0 = arith.constant 0 : i32
    return %arg0, %c0_i32 : i32, i32
  }
  func.func @transform_1(%arg0: i32) -> (i32, i32) {
    %c0_i32 = arith.constant 0 : i32
    %c0_i32_0 = arith.constant 0 : i32
    %c0_i32_1 = arith.constant 0 : i32
    return %c0_i32, %c0_i32_0 : i32, i32
  }
  func.func @transform_2(%arg0: i32) -> (i32, i32) {
    %c0_i32 = arith.constant 0 : i32
    %c0_i32_0 = arith.constant 0 : i32
    %c0_i32_1 = arith.constant 0 : i32
    return %c0_i32, %c0_i32_0 : i32, i32
  }
  func.func @transform_3(%arg0: i32) -> (i32, i32) {
    %c0_i32 = arith.constant 0 : i32
    %c0_i32_0 = arith.constant 0 : i32
    %c0_i32_1 = arith.constant 0 : i32
    return %c0_i32, %c0_i32_0 : i32, i32
  }
  func.func @transform_4(%arg0: i32) -> (i32, i32) {
    %c0_i32 = arith.constant 0 : i32
    %c0_i32_0 = arith.constant 0 : i32
    %c0_i32_1 = arith.constant 0 : i32
    return %c0_i32, %c0_i32_0 : i32, i32
  }
  func.func @transform_5(%arg0: i32) -> (i32, i32) {
    %c0_i32 = arith.constant 0 : i32
    %c0_i32_0 = arith.constant 0 : i32
    return %arg0, %c0_i32 : i32, i32
  }
}

module attributes {stable_mosaic.version = 11 : i64} {
  func.func @kernel(%arg0: i32, %arg1: memref<8x128xf32, #tpu.memory_space<vmem>>, %arg2: memref<128x128xbf16, #tpu.memory_space<vmem>>, %arg3: memref<1x128xf32, #tpu.memory_space<vmem>>, %arg4: memref<128x128xbf16, #tpu.memory_space<vmem>>, %arg5: memref<1x128xf32, #tpu.memory_space<vmem>>, %arg6: memref<8x128xf32, #tpu.memory_space<vmem>>) attributes {dimension_semantics = [#tpu.dimension_semantics<parallel>], iteration_bounds = array<i64: 1>, scalar_prefetch = 0 : i64, scratch_operands = 0 : i64, tpu.core_type = #tpu.core_type<tc>, window_params = [{transform_indices = @transform_0, window_bounds = array<i64: 8, 128>}, {pipeline_mode = #tpu.pipeline_mode<synchronous>, transform_indices = @transform_1, window_bounds = array<i64: 128, 128>}, {pipeline_mode = #tpu.pipeline_mode<synchronous>, transform_indices = @transform_2, window_bounds = array<i64: 1, 128>}, {pipeline_mode = #tpu.pipeline_mode<synchronous>, transform_indices = @transform_3, window_bounds = array<i64: 128, 128>}, {pipeline_mode = #tpu.pipeline_mode<synchronous>, transform_indices = @transform_4, window_bounds = array<i64: 1, 128>}, {transform_indices = @transform_5, window_bounds = array<i64: 8, 128>}]} {
    %c0 = arith.constant 0 : index
    %c0_0 = arith.constant 0 : index
    %0 = vector.load %arg1[%c0, %c0_0] : memref<8x128xf32, #tpu.memory_space<vmem>>, vector<8x128xf32>
    %1 = arith.truncf %0 : vector<8x128xf32> to vector<8x128xbf16>
    %cst = arith.constant 0.000000e+00 : f32
    %2 = vector.broadcast %cst : f32 to vector<8x128xf32>
    %c0_1 = arith.constant 0 : index
    %c0_2 = arith.constant 0 : index
    %3 = vector.load %arg5[%c0_1, %c0_2] : memref<1x128xf32, #tpu.memory_space<vmem>>, vector<1x128xf32>
    %4 = vector.broadcast %3 : vector<1x128xf32> to vector<8x128xf32>
    %5 = arith.addf %2, %4 : vector<8x128xf32>
    %c0_3 = arith.constant 0 : index
    %c0_4 = arith.constant 0 : index
    %6 = vector.load %arg2[%c0_3, %c0_4] : memref<128x128xbf16, #tpu.memory_space<vmem>>, vector<128x128xbf16>
    %cst_5 = arith.constant dense<0.000000e+00> : vector<8x128xf32>
    %7 = tpu.matmul %1, %6, %cst_5 {dimension_numbers = #tpu.dot_dimension_numbers<[1], [0], [0], [1], [0, 0, 1, 1], [], []>} : vector<8x128xbf16>, vector<128x128xbf16>, vector<8x128xf32> -> vector<8x128xf32>
    %c0_6 = arith.constant 0 : index
    %c0_7 = arith.constant 0 : index
    %8 = vector.load %arg3[%c0_6, %c0_7] : memref<1x128xf32, #tpu.memory_space<vmem>>, vector<1x128xf32>
    %9 = vector.broadcast %8 : vector<1x128xf32> to vector<8x128xf32>
    %10 = arith.addf %7, %9 : vector<8x128xf32>
    %11 = arith.truncf %10 : vector<8x128xf32> to vector<8x128xbf16>
    %c0_8 = arith.constant 0 : index
    %c0_9 = arith.constant 0 : index
    %12 = vector.load %arg4[%c0_8, %c0_9] : memref<128x128xbf16, #tpu.memory_space<vmem>>, vector<128x128xbf16>
    %cst_10 = arith.constant dense<0.000000e+00> : vector<8x128xf32>
    %13 = tpu.matmul %11, %12, %cst_10 {dimension_numbers = #tpu.dot_dimension_numbers<[1], [0], [0], [1], [0, 0, 1, 1], [], []>} : vector<8x128xbf16>, vector<128x128xbf16>, vector<8x128xf32> -> vector<8x128xf32>
    %14 = arith.addf %5, %13 : vector<8x128xf32>
    %c0_11 = arith.constant 0 : index
    %c0_12 = arith.constant 0 : index
    %15 = vector.load %arg6[%c0_11, %c0_12] : memref<8x128xf32, #tpu.memory_space<vmem>>, vector<8x128xf32>
    tpu.vector_store %arg6[%c0_11, %c0_12], %14 {strides = array<i32>} : memref<8x128xf32, #tpu.memory_space<vmem>>, vector<8x128xf32>,
    return
  }
  func.func @transform_0(%arg0: i32) -> (i32, i32) {
    %c0_i32 = arith.constant 0 : i32
    %c0_i32_0 = arith.constant 0 : i32
    return %arg0, %c0_i32 : i32, i32
  }
  func.func @transform_1(%arg0: i32) -> (i32, i32) {
    %c0_i32 = arith.constant 0 : i32
    %c0_i32_0 = arith.constant 0 : i32
    %c0_i32_1 = arith.constant 0 : i32
    return %c0_i32, %c0_i32_0 : i32, i32
  }
  func.func @transform_2(%arg0: i32) -> (i32, i32) {
    %c0_i32 = arith.constant 0 : i32
    %c0_i32_0 = arith.constant 0 : i32
    %c0_i32_1 = arith.constant 0 : i32
    return %c0_i32, %c0_i32_0 : i32, i32
  }
  func.func @transform_3(%arg0: i32) -> (i32, i32) {
    %c0_i32 = arith.constant 0 : i32
    %c0_i32_0 = arith.constant 0 : i32
    %c0_i32_1 = arith.constant 0 : i32
    return %c0_i32, %c0_i32_0 : i32, i32
  }
  func.func @transform_4(%arg0: i32) -> (i32, i32) {
    %c0_i32 = arith.constant 0 : i32
    %c0_i32_0 = arith.constant 0 : i32
    %c0_i32_1 = arith.constant 0 : i32
    return %c0_i32, %c0_i32_0 : i32, i32
  }
  func.func @transform_5(%arg0: i32) -> (i32, i32) {
    %c0_i32 = arith.constant 0 : i32
    %c0_i32_0 = arith.constant 0 : i32
    return %arg0, %c0_i32 : i32, i32
  }
}

</mosaic_0001>

<bundles_post_ra>
// kernel: tpu_custom_call.1
= control target key start
LH: loop header
LB: loop body
LE: loop exit
PB: predicated region body
PF: predicated region fallthrough
CT: control target
= control target key end

     0   :  { %10 = vsyncpa [#allocation3], 0  ;;  %s547_s0 = inlined_call_operand.hbm [shape: f32[8,128], index: 0, kind: input, shape index: {}]   ;;  %s548_s1 = inlined_call_operand.hbm [shape: bf16[128,128], index: 1, kind: input, shape index: {}]   ;;  %s549_s2 = inlined_call_operand.vmem [shape: f32[1,128], index: 2, kind: input, shape index: {}]   ;;  %s550_s3 = inlined_call_operand.hbm [shape: bf16[128,128], index: 3, kind: input, shape index: {}]   ;;  %s551_s4 = inlined_call_operand.vmem [shape: f32[1,128], index: 4, kind: input, shape index: {}]   ;;  %s552_s5 = inlined_call_operand.hbm [shape: f32[8,128], index: 5, kind: output, shape index: {}]  }
   0x1   :  { %11 = vsyncpa [#allocation6], 0 }
   0x2   :  { %12 = vsyncpa [#allocation4], 0  ;;  %s491_s18 = smov [#allocation5]  }
   0x3   :  { %s28_s19 = sshll.u32 %s491_s18, 4  ;;  %s29_s19 = int_to_ptr.vmem [resolvable:$true] %s28_s19 }
   0x4   :  { %s413_s20 = scalar_lea.vmem %s29_s19, 1024  ;;  %p418_p1 = scmp.lt.s32.totalorder %s29_s19, %s29_s19 }
   0x5   :  { %p414_p0 = scmp.ne.s32.totalorder %s29_s19, %s413_s20  ;;  %p419_p2 = scmp.lt.s32.totalorder %s413_s20, %s413_s20 }
   0x7   :  { %p420_p3 = por %p419_p2, %p418_p1 }
   0x9   :  { %p421_p4 = pnand %p420_p3, %p414_p0 }
   0xb   :  { %424 = shalt.err (!%p421_p4)
}
   0xc   :  { %s492_s21 = smov 64   ;;  %s493_s22 = smov 4  }
   0xd   :  { %34 = dma.hbm_to_vmem [thread:$0]  %s548_s1, 1024, %s29_s19, [#allocation6], %s492_s21, %s492_s21, %s493_s22  }
   0xe   :  { %s494_s25 = smov [#allocation2]   ;;  %s495_s27 = smov [#allocation7]  }
   0xf   :  { %s19_s26 = sshll.u32 %s494_s25, 4  ;;  %s42_s28 = sshll.u32 %s495_s27, 4  ;;  %s20_s26 = int_to_ptr.vmem [resolvable:$true] %s19_s26  ;;  %s43_s28 = int_to_ptr.vmem [resolvable:$true] %s42_s28 }
  0x10   :  { %s433_s29 = scalar_lea.vmem %s20_s26, 128  ;;  %p438_p6 = scmp.lt.s32.totalorder %s20_s26, %s20_s26 }
  0x11   :  { %p434_p5 = scmp.ne.s32.totalorder %s20_s26, %s433_s29  ;;  %p439_p7 = scmp.lt.s32.totalorder %s433_s29, %s433_s29 }
  0x13   :  { %p440_p8 = por %p439_p7, %p438_p6 }
  0x15   :  { %p441_p9 = pnand %p440_p8, %p434_p5 }
  0x17   :  { %444 = shalt.err (!%p441_p9)
}
  0x18   :  { %22 = dma.hbm_to_vmem [thread:$0]  %s547_s0, 128, %s20_s26, [#allocation3]  }
  0x19   :  { %s453_s7 = scalar_lea.vmem %s43_s28, 1024  ;;  %p458_p11 = scmp.lt.s32.totalorder %s43_s28, %s43_s28 }
  0x1a   :  { %p454_p10 = scmp.ne.s32.totalorder %s43_s28, %s453_s7  ;;  %p459_p12 = scmp.lt.s32.totalorder %s453_s7, %s453_s7 }
  0x1c   :  { %p460_p13 = por %p459_p12, %p458_p11 }
  0x1e   :  { %p461_p0 = pnand %p460_p13, %p454_p10 }
  0x20   :  { %464 = shalt.err (!%p461_p0)
}
  0x21   :  { %48 = dma.hbm_to_vmem [thread:$0]  %s550_s3, 1024, %s43_s28, [#allocation6], %s492_s21, %s492_s21, %s493_s22  }
  0x22   :  { %485 = dma.done.wait [#allocation3], 128  }
  0x23   :  { %486 = vsyncadd [#allocation3], 4294967168 }
  0x24   :  { %487 = dma.done.wait [#allocation6], 2048  }
  0x25   :  { %488 = vsyncadd [#allocation6], 4294965248  ;;  %v496_v0 = vmov 0.0   ;;  %vm497_vm0 = vmmov 0   ;;  %v389_v1 = vld [vmem:[#allocation5 + $0x38] sm:$0xff]   ;;  %v390_v2 = vld [vmem:[#allocation5 + $0x30] sm:$0xff]  }
  0x26   :  { %341 = vmatprep.subr.bf16.mxu0 %v496_v0  ;;  %357 = vmatprep.mubr.msk.bf16.mxu0 %vm497_vm0, %v496_v0  ;;  %v391_v3 = vld [vmem:[#allocation5 + $0x28] sm:$0xff]   ;;  %v397_v4 = vld [vmem:[#allocation7 + $0x38] sm:$0xff]   ;;  %v392_v5 = vld [vmem:[#allocation5 + $0x20] sm:$0xff]   ;;  %s498_s11 = smov [#allocation8]  }
  0x27   :  { %361 = vmatprep.subr.bf16.mxu1 %v496_v0  ;;  %377 = vmatprep.mubr.msk.bf16.mxu1 %vm497_vm0, %v496_v0  ;;  %v398_v6 = vld [vmem:[#allocation7 + $0x30] sm:$0xff]   ;;  %v393_v7 = vld [vmem:[#allocation5 + $0x18] sm:$0xff]   ;;  %v399_v8 = vld [vmem:[#allocation7 + $0x28] sm:$0xff]   ;;  %s295_s12 = sshll.u32 %s498_s11, 4  ;;  %s296_s12 = int_to_ptr.vmem [resolvable:$true] %s295_s12 }
  0x28   :  { %342 = vmatpush3.bf16.msra.mxu0 %v389_v1  ;;  %362 = vmatpush3.bf16.msra.mxu1 %v397_v4  ;;  %v394_v9 = vld [vmem:[#allocation5 + $0x10] sm:$0xff]   ;;  %v400_v10 = vld [vmem:[#allocation7 + $0x20] sm:$0xff]   ;;  %v395_v11 = vld [vmem:[#allocation5 + $0x8] sm:$0xff]   ;;  %p470_p2 = scmp.lt.s32.totalorder %s296_s12, %s296_s12 }
  0x29   :  { %343 = vmatprep.subr.bf16.mxu0 %v496_v0  ;;  %363 = vmatprep.subr.bf16.mxu1 %v496_v0  ;;  %v401_v12 = vld [vmem:[#allocation7 + $0x18] sm:$0xff]   ;;  %v396_v13 = vld [vmem:[#allocation5] sm:$0xff]   ;;  %v402_v15 = vld [vmem:[#allocation7 + $0x10] sm:$0xff]  }
  0x2a   :  { %v61_v14 = vld [vmem:[#allocation2] sm:$0xff]  ;;  %v403_v17 = vld [vmem:[#allocation7 + $0x8] sm:$0xff]   ;;  %v404_v18 = vld [vmem:[#allocation7] sm:$0xff]  }
  0x2b   :  { %v62_v16 = vpack.c.bf16 %v61_v14, %v61_v14  ;;  %v306_v19 = vld [vmem:[%s549_s2] ss:$0 sm:$0xff]  ;;  %s465_s2 = scalar_lea.vmem %s296_s12, 128 }
  0x2c   :  { %344 = vmatpush3.bf16.msra.mxu0 %v390_v2  ;;  %364 = vmatpush3.bf16.msra.mxu1 %v398_v6  ;;  %v305_v26 = vld [vmem:[%s551_s4] ss:$0 sm:$0xff]  ;;  %p466_p1 = scmp.ne.s32.totalorder %s296_s12, %s465_s2  ;;  %p471_p3 = scmp.lt.s32.totalorder %s465_s2, %s465_s2 }
  0x2d   :  { %345 = vmatprep.subr.bf16.mxu0 %v496_v0  ;;  %365 = vmatprep.subr.bf16.mxu1 %v496_v0 }
  0x2e   :  { %p472_p4 = por %p471_p3, %p470_p2 }
  0x30   :  { %346 = vmatpush3.bf16.msra.mxu0 %v391_v3  ;;  %366 = vmatpush3.bf16.msra.mxu1 %v399_v8  ;;  %p473_p5 = pnand %p472_p4, %p466_p1 }
  0x31   :  { %347 = vmatprep.subr.bf16.mxu0 %v496_v0  ;;  %367 = vmatprep.subr.bf16.mxu1 %v496_v0 }
  0x34   :  { %348 = vmatpush3.bf16.msra.mxu0 %v392_v5  ;;  %368 = vmatpush3.bf16.msra.mxu1 %v400_v10 }
  0x35   :  { %349 = vmatprep.subr.bf16.mxu0 %v496_v0  ;;  %369 = vmatprep.subr.bf16.mxu1 %v496_v0 }
  0x38   :  { %350 = vmatpush3.bf16.msra.mxu0 %v393_v7  ;;  %370 = vmatpush3.bf16.msra.mxu1 %v401_v12 }
  0x39   :  { %351 = vmatprep.subr.bf16.mxu0 %v496_v0  ;;  %371 = vmatprep.subr.bf16.mxu1 %v496_v0 }
  0x3c   :  { %352 = vmatpush3.bf16.msra.mxu0 %v394_v9  ;;  %372 = vmatpush3.bf16.msra.mxu1 %v402_v15 }
  0x3d   :  { %353 = vmatprep.subr.bf16.mxu0 %v496_v0  ;;  %373 = vmatprep.subr.bf16.mxu1 %v496_v0 }
  0x40   :  { %354 = vmatpush3.bf16.msra.mxu0 %v395_v11  ;;  %374 = vmatpush3.bf16.msra.mxu1 %v403_v17 }
  0x41   :  { %355 = vmatprep.subr.bf16.mxu0 %v496_v0  ;;  %375 = vmatprep.subr.bf16.mxu1 %v496_v0 }
  0x44   :  { %356 = vmatpush3.bf16.msra.mxu0 %v396_v13  ;;  %376 = vmatpush3.bf16.msra.mxu1 %v404_v18 }
  0x47   :  { %358 = vmatmul.mubr.bf16.vlgmr.msra.gmra.mxu0 %v62_v16 }
 0x107   :  { %v176_v20 = vpop.f32.mrf.mxu0 }
 0x108   :  { %v177_v21 = vadd.f32 %v306_v19, %v176_v20 }
 0x109   :  { %v359_v22 = vpop.f32.mrf.mxu0 }
 0x10a   :  { %v182_v23 = vpack.c.bf16 %v177_v21, %v177_v21 }
 0x10b   :  { %v179_v24 = vpop.f32.mrf.mxu0 }
 0x10c   :  { %378 = vmatmul.mubr.bf16.vlgmr.msra.gmra.mxu1 %v182_v23 }
 0x10d   :  { %v360_v25 = vpop.f32.mrf.mxu0 }
 0x1cc   :  { %v281_v27 = vpop.f32.mrf.mxu1 }
 0x1cd   :  { %v287_v28 = vadd.f32 %v305_v26, %v281_v27 }
 0x1ce   :  { %v379_v29 = vpop.f32.mrf.mxu1 }
 0x1cf   :  { %288 = vst [vmem:[#allocation8] sm:$0xff] %v287_v28 }
 0x1d0   :  { %v284_v30 = vpop.f32.mrf.mxu1 }
 0x1d1   :  { %476 = shalt.err (!%p473_p5)
}
 0x1d2   :  { %298 = dma.vmem_to_hbm [thread:$0]  %s296_s12, 128, %s552_s5, [#allocation4]   ;;  %v380_v31 = vpop.f32.mrf.mxu1 }
 0x1d3   :  { %489 = dma.done.wait [#allocation4], 128  }
 0x1d4   :  { %490 = vsyncadd [#allocation4], 4294967168 }
 0x1d5   :  { %302 = vsyncpa [#allocation3], 1 }
 0x1d6   :  { %303 = vsyncpa [#allocation6], 1 }
 0x1d7   :  { %304 = vsyncpa [#allocation4], 1 }

// kernel: tpu_custom_call.1
= control target key start
LH: loop header
LB: loop body
LE: loop exit
PB: predicated region body
PF: predicated region fallthrough
CT: control target
= control target key end

     0   :  { %10 = vsyncpa [#allocation3], 0  ;;  %s547_s0 = inlined_call_operand.hbm [shape: f32[8,128], index: 0, kind: input, shape index: {}]   ;;  %s548_s1 = inlined_call_operand.hbm [shape: bf16[128,128], index: 1, kind: input, shape index: {}]   ;;  %s549_s2 = inlined_call_operand.vmem [shape: f32[1,128], index: 2, kind: input, shape index: {}]   ;;  %s550_s3 = inlined_call_operand.hbm [shape: bf16[128,128], index: 3, kind: input, shape index: {}]   ;;  %s551_s4 = inlined_call_operand.vmem [shape: f32[1,128], index: 4, kind: input, shape index: {}]   ;;  %s552_s5 = inlined_call_operand.hbm [shape: f32[8,128], index: 5, kind: output, shape index: {}]  }
   0x1   :  { %11 = vsyncpa [#allocation6], 0 }
   0x2   :  { %12 = vsyncpa [#allocation4], 0  ;;  %s491_s18 = smov [#allocation5]  }
   0x3   :  { %s28_s19 = sshll.u32 %s491_s18, 4  ;;  %s29_s19 = int_to_ptr.vmem [resolvable:$true] %s28_s19 }
   0x4   :  { %s413_s20 = scalar_lea.vmem %s29_s19, 1024  ;;  %p418_p1 = scmp.lt.s32.totalorder %s29_s19, %s29_s19 }
   0x5   :  { %p414_p0 = scmp.ne.s32.totalorder %s29_s19, %s413_s20  ;;  %p419_p2 = scmp.lt.s32.totalorder %s413_s20, %s413_s20 }
   0x7   :  { %p420_p3 = por %p419_p2, %p418_p1 }
   0x9   :  { %p421_p4 = pnand %p420_p3, %p414_p0 }
   0xb   :  { %424 = shalt.err (!%p421_p4)
}
   0xc   :  { %s492_s21 = smov 64   ;;  %s493_s22 = smov 4  }
   0xd   :  { %34 = dma.hbm_to_vmem [thread:$0]  %s548_s1, 1024, %s29_s19, [#allocation6], %s492_s21, %s492_s21, %s493_s22  }
   0xe   :  { %s494_s25 = smov [#allocation2]   ;;  %s495_s27 = smov [#allocation7]  }
   0xf   :  { %s19_s26 = sshll.u32 %s494_s25, 4  ;;  %s42_s28 = sshll.u32 %s495_s27, 4  ;;  %s20_s26 = int_to_ptr.vmem [resolvable:$true] %s19_s26  ;;  %s43_s28 = int_to_ptr.vmem [resolvable:$true] %s42_s28 }
  0x10   :  { %s433_s29 = scalar_lea.vmem %s20_s26, 128  ;;  %p438_p6 = scmp.lt.s32.totalorder %s20_s26, %s20_s26 }
  0x11   :  { %p434_p5 = scmp.ne.s32.totalorder %s20_s26, %s433_s29  ;;  %p439_p7 = scmp.lt.s32.totalorder %s433_s29, %s433_s29 }
  0x13   :  { %p440_p8 = por %p439_p7, %p438_p6 }
  0x15   :  { %p441_p9 = pnand %p440_p8, %p434_p5 }
  0x17   :  { %444 = shalt.err (!%p441_p9)
}
  0x18   :  { %22 = dma.hbm_to_vmem [thread:$0]  %s547_s0, 128, %s20_s26, [#allocation3]  }
  0x19   :  { %s453_s7 = scalar_lea.vmem %s43_s28, 1024  ;;  %p458_p11 = scmp.lt.s32.totalorder %s43_s28, %s43_s28 }
  0x1a   :  { %p454_p10 = scmp.ne.s32.totalorder %s43_s28, %s453_s7  ;;  %p459_p12 = scmp.lt.s32.totalorder %s453_s7, %s453_s7 }
  0x1c   :  { %p460_p13 = por %p459_p12, %p458_p11 }
  0x1e   :  { %p461_p0 = pnand %p460_p13, %p454_p10 }
  0x20   :  { %464 = shalt.err (!%p461_p0)
}
  0x21   :  { %48 = dma.hbm_to_vmem [thread:$0]  %s550_s3, 1024, %s43_s28, [#allocation6], %s492_s21, %s492_s21, %s493_s22  }
  0x22   :  { %485 = dma.done.wait [#allocation3], 128  }
  0x23   :  { %486 = vsyncadd [#allocation3], 4294967168 }
  0x24   :  { %487 = dma.done.wait [#allocation6], 2048  }
  0x25   :  { %488 = vsyncadd [#allocation6], 4294965248  ;;  %v496_v0 = vmov 0.0   ;;  %vm497_vm0 = vmmov 0   ;;  %v389_v1 = vld [vmem:[#allocation5 + $0x38] sm:$0xff]   ;;  %v390_v2 = vld [vmem:[#allocation5 + $0x30] sm:$0xff]  }
  0x26   :  { %341 = vmatprep.subr.bf16.mxu0 %v496_v0  ;;  %357 = vmatprep.mubr.msk.bf16.mxu0 %vm497_vm0, %v496_v0  ;;  %v391_v3 = vld [vmem:[#allocation5 + $0x28] sm:$0xff]   ;;  %v397_v4 = vld [vmem:[#allocation7 + $0x38] sm:$0xff]   ;;  %v392_v5 = vld [vmem:[#allocation5 + $0x20] sm:$0xff]   ;;  %s498_s11 = smov [#allocation8]  }
  0x27   :  { %361 = vmatprep.subr.bf16.mxu1 %v496_v0  ;;  %377 = vmatprep.mubr.msk.bf16.mxu1 %vm497_vm0, %v496_v0  ;;  %v398_v6 = vld [vmem:[#allocation7 + $0x30] sm:$0xff]   ;;  %v393_v7 = vld [vmem:[#allocation5 + $0x18] sm:$0xff]   ;;  %v399_v8 = vld [vmem:[#allocation7 + $0x28] sm:$0xff]   ;;  %s295_s12 = sshll.u32 %s498_s11, 4  ;;  %s296_s12 = int_to_ptr.vmem [resolvable:$true] %s295_s12 }
  0x28   :  { %342 = vmatpush3.bf16.msra.mxu0 %v389_v1  ;;  %362 = vmatpush3.bf16.msra.mxu1 %v397_v4  ;;  %v394_v9 = vld [vmem:[#allocation5 + $0x10] sm:$0xff]   ;;  %v400_v10 = vld [vmem:[#allocation7 + $0x20] sm:$0xff]   ;;  %v395_v11 = vld [vmem:[#allocation5 + $0x8] sm:$0xff]   ;;  %p470_p2 = scmp.lt.s32.totalorder %s296_s12, %s296_s12 }
  0x29   :  { %343 = vmatprep.subr.bf16.mxu0 %v496_v0  ;;  %363 = vmatprep.subr.bf16.mxu1 %v496_v0  ;;  %v401_v12 = vld [vmem:[#allocation7 + $0x18] sm:$0xff]   ;;  %v396_v13 = vld [vmem:[#allocation5] sm:$0xff]   ;;  %v402_v15 = vld [vmem:[#allocation7 + $0x10] sm:$0xff]  }
  0x2a   :  { %v61_v14 = vld [vmem:[#allocation2] sm:$0xff]  ;;  %v403_v17 = vld [vmem:[#allocation7 + $0x8] sm:$0xff]   ;;  %v404_v18 = vld [vmem:[#allocation7] sm:$0xff]  }
  0x2b   :  { %v62_v16 = vpack.c.bf16 %v61_v14, %v61_v14  ;;  %v306_v19 = vld [vmem:[%s549_s2] ss:$0 sm:$0xff]  ;;  %s465_s2 = scalar_lea.vmem %s296_s12, 128 }
  0x2c   :  { %344 = vmatpush3.bf16.msra.mxu0 %v390_v2  ;;  %364 = vmatpush3.bf16.msra.mxu1 %v398_v6  ;;  %v305_v26 = vld [vmem:[%s551_s4] ss:$0 sm:$0xff]  ;;  %p466_p1 = scmp.ne.s32.totalorder %s296_s12, %s465_s2  ;;  %p471_p3 = scmp.lt.s32.totalorder %s465_s2, %s465_s2 }
  0x2d   :  { %345 = vmatprep.subr.bf16.mxu0 %v496_v0  ;;  %365 = vmatprep.subr.bf16.mxu1 %v496_v0 }
  0x2e   :  { %p472_p4 = por %p471_p3, %p470_p2 }
  0x30   :  { %346 = vmatpush3.bf16.msra.mxu0 %v391_v3  ;;  %366 = vmatpush3.bf16.msra.mxu1 %v399_v8  ;;  %p473_p5 = pnand %p472_p4, %p466_p1 }
  0x31   :  { %347 = vmatprep.subr.bf16.mxu0 %v496_v0  ;;  %367 = vmatprep.subr.bf16.mxu1 %v496_v0 }
  0x34   :  { %348 = vmatpush3.bf16.msra.mxu0 %v392_v5  ;;  %368 = vmatpush3.bf16.msra.mxu1 %v400_v10 }
  0x35   :  { %349 = vmatprep.subr.bf16.mxu0 %v496_v0  ;;  %369 = vmatprep.subr.bf16.mxu1 %v496_v0 }
  0x38   :  { %350 = vmatpush3.bf16.msra.mxu0 %v393_v7  ;;  %370 = vmatpush3.bf16.msra.mxu1 %v401_v12 }
  0x39   :  { %351 = vmatprep.subr.bf16.mxu0 %v496_v0  ;;  %371 = vmatprep.subr.bf16.mxu1 %v496_v0 }
  0x3c   :  { %352 = vmatpush3.bf16.msra.mxu0 %v394_v9  ;;  %372 = vmatpush3.bf16.msra.mxu1 %v402_v15 }
  0x3d   :  { %353 = vmatprep.subr.bf16.mxu0 %v496_v0  ;;  %373 = vmatprep.subr.bf16.mxu1 %v496_v0 }
  0x40   :  { %354 = vmatpush3.bf16.msra.mxu0 %v395_v11  ;;  %374 = vmatpush3.bf16.msra.mxu1 %v403_v17 }
  0x41   :  { %355 = vmatprep.subr.bf16.mxu0 %v496_v0  ;;  %375 = vmatprep.subr.bf16.mxu1 %v496_v0 }
  0x44   :  { %356 = vmatpush3.bf16.msra.mxu0 %v396_v13  ;;  %376 = vmatpush3.bf16.msra.mxu1 %v404_v18 }
  0x47   :  { %358 = vmatmul.mubr.bf16.vlgmr.msra.gmra.mxu0 %v62_v16 }
 0x107   :  { %v176_v20 = vpop.f32.mrf.mxu0 }
 0x108   :  { %v177_v21 = vadd.f32 %v306_v19, %v176_v20 }
 0x109   :  { %v359_v22 = vpop.f32.mrf.mxu0 }
 0x10a   :  { %v182_v23 = vpack.c.bf16 %v177_v21, %v177_v21 }
 0x10b   :  { %v179_v24 = vpop.f32.mrf.mxu0 }
 0x10c   :  { %378 = vmatmul.mubr.bf16.vlgmr.msra.gmra.mxu1 %v182_v23 }
 0x10d   :  { %v360_v25 = vpop.f32.mrf.mxu0 }
 0x1cc   :  { %v281_v27 = vpop.f32.mrf.mxu1 }
 0x1cd   :  { %v287_v28 = vadd.f32 %v305_v26, %v281_v27 }
 0x1ce   :  { %v379_v29 = vpop.f32.mrf.mxu1 }
 0x1cf   :  { %288 = vst [vmem:[#allocation8] sm:$0xff] %v287_v28 }
 0x1d0   :  { %v284_v30 = vpop.f32.mrf.mxu1 }
 0x1d1   :  { %476 = shalt.err (!%p473_p5)
}
 0x1d2   :  { %298 = dma.vmem_to_hbm [thread:$0]  %s296_s12, 128, %s552_s5, [#allocation4]   ;;  %v380_v31 = vpop.f32.mrf.mxu1 }
 0x1d3   :  { %489 = dma.done.wait [#allocation4], 128  }
 0x1d4   :  { %490 = vsyncadd [#allocation4], 4294967168 }
 0x1d5   :  { %302 = vsyncpa [#allocation3], 1 }
 0x1d6   :  { %303 = vsyncpa [#allocation6], 1 }
 0x1d7   :  { %304 = vsyncpa [#allocation4], 1 }

</bundles_post_ra>
